<compile_context>
chip_gen: v7x
topology: tpu7x:2x2x1
jax: 0.10.0
libtpu: 0.0.40
codegen_flags: <defaults>
</compile_context>

<pallas_src>
import functools

import jax
import jax.numpy as jnp
from jax.experimental import pallas as pl
from jax.experimental.pallas import tpu as pltpu

_LANE = 128
_SUBLANE = 8


def _round_up(n, m):
    return ((n + m - 1) // m) * m


def _mlp_kernel(x_ref,
                w1_ref, b1_ref,
                w2_ref, b2_ref,
                w3_ref, b3_ref,
                w4_ref, b4_ref,
                o_ref):
    """Fused 4-layer MLP: (Linear + ReLU) x3 -> Linear.

    Matmul operands are bf16 (MXU fast path); accumulation, bias add and ReLU
    run in f32 on the VPU.
    """
    mm_dtype = w1_ref.dtype

    h = jnp.dot(x_ref[...], w1_ref[...], preferred_element_type=jnp.float32)
    h = jnp.maximum(h + b1_ref[...], 0.0).astype(mm_dtype)

    h = jnp.dot(h, w2_ref[...], preferred_element_type=jnp.float32)
    h = jnp.maximum(h + b2_ref[...], 0.0).astype(mm_dtype)

    h = jnp.dot(h, w3_ref[...], preferred_element_type=jnp.float32)
    h = jnp.maximum(h + b3_ref[...], 0.0).astype(mm_dtype)

    out = jnp.dot(h, w4_ref[...], preferred_element_type=jnp.float32) + b4_ref[...]
    o_ref[...] = out.astype(o_ref.dtype)


def generator_forward(x, params, *, batch_tile=256,
                      matmul_dtype=jnp.bfloat16, vmem_limit_bytes=None):
    """GeneratorModel forward pass via one fused Pallas kernel.

    x:       (B, noise_dim) float32
    params:  dict with w1,b1,w2,b2,w3,b3,w4,b4  (W: (in, out), b: (1, out))
    returns: (B, output_dim) float32
    """
    B, noise_dim = x.shape
    w1, b1 = params["w1"], params["b1"]
    w2, b2 = params["w2"], params["b2"]
    w3, b3 = params["w3"], params["b3"]
    w4, b4 = params["w4"], params["b4"]
    output_dim = w4.shape[1]

    # --- batch tile: bounded, sublane-granular; many grid steps for large B.
    batch_tile = max(_SUBLANE, _round_up(int(batch_tile), _SUBLANE))
    if B <= batch_tile:
        batch_tile = _round_up(B, _SUBLANE)
    B_pad = _round_up(B, batch_tile)
    grid = (B_pad // batch_tile,)

    # --- lane-dense feature dims (zero padding keeps the math exact).
    d0 = _round_up(noise_dim, _LANE)
    d1 = _round_up(w1.shape[1], _LANE)
    d2 = _round_up(w2.shape[1], _LANE)
    d3 = _round_up(w3.shape[1], _LANE)
    d4 = _round_up(output_dim, _LANE)

    def pad2(a, rows, cols, dtype):
        a = a.astype(dtype)
        return jnp.pad(a, ((0, rows - a.shape[0]), (0, cols - a.shape[1])))

    x_p = pad2(x, B_pad, d0, matmul_dtype)
    w1_p, b1_p = pad2(w1, d0, d1, matmul_dtype), pad2(b1, 1, d1, jnp.float32)
    w2_p, b2_p = pad2(w2, d1, d2, matmul_dtype), pad2(b2, 1, d2, jnp.float32)
    w3_p, b3_p = pad2(w3, d2, d3, matmul_dtype), pad2(b3, 1, d3, jnp.float32)
    w4_p, b4_p = pad2(w4, d3, d4, matmul_dtype), pad2(b4, 1, d4, jnp.float32)

    # Weights/biases: full-array blocks with a constant index_map, so the same
    # block is used at every grid step -> DMA'd once, resident in VMEM.
    def full_spec(arr):
        return pl.BlockSpec(arr.shape, lambda i: (0, 0))

    flops = 2 * B_pad * (d0 * d1 + d1 * d2 + d2 * d3 + d3 * d4)
    bytes_accessed = sum(int(a.size) * a.dtype.itemsize
                         for a in (x_p, w1_p, b1_p, w2_p, b2_p,
                                   w3_p, b3_p, w4_p, b4_p))
    bytes_accessed += int(B_pad) * int(d4) * jnp.dtype(x.dtype).itemsize
    cost = pl.CostEstimate(flops=flops, transcendentals=0,
                           bytes_accessed=bytes_accessed)

    out = pl.pallas_call(
        _mlp_kernel,
        out_shape=jax.ShapeDtypeStruct((B_pad, d4), x.dtype),
        grid_spec=pltpu.PrefetchScalarGridSpec(
            num_scalar_prefetch=0,
            grid=grid,
            in_specs=[
                pl.BlockSpec((batch_tile, d0), lambda i: (i, 0)),  # noise tile
                full_spec(w1_p), full_spec(b1_p),
                full_spec(w2_p), full_spec(b2_p),
                full_spec(w3_p), full_spec(b3_p),
                full_spec(w4_p), full_spec(b4_p),
            ],
            out_specs=pl.BlockSpec((batch_tile, d4), lambda i: (i, 0)),
        ),
        compiler_params=pltpu.CompilerParams(
            dimension_semantics=("parallel",),
            vmem_limit_bytes=vmem_limit_bytes,
        ),
        cost_estimate=cost,
    )(x_p, w1_p, b1_p, w2_p, b2_p, w3_p, b3_p, w4_p, b4_p)

    # Slice off batch / lane padding outside the kernel.
    return out[:B, :output_dim]


def init_generator_params(key, noise_dim, output_dim, hidden_dim=128,
                          dtype=jnp.float32):
    """Deterministic init mirroring nn.Linear's U(-1/sqrt(fan_in), 1/sqrt(fan_in))."""
    dims = [
        (noise_dim, hidden_dim),
        (hidden_dim, hidden_dim * 2),
        (hidden_dim * 2, hidden_dim * 4),
        (hidden_dim * 4, output_dim),
    ]
    params = {}
    for idx, (fan_in, fan_out) in enumerate(dims, start=1):
        key, kw, kb = jax.random.split(key, 3)
        bound = 1.0 / jnp.sqrt(jnp.asarray(fan_in, dtype=jnp.float32))
        params[f"w{idx}"] = jax.random.uniform(
            kw, (fan_in, fan_out), dtype=dtype, minval=-bound, maxval=bound)
        params[f"b{idx}"] = jax.random.uniform(
            kb, (1, fan_out), dtype=dtype, minval=-bound, maxval=bound)
    return params


def generator_reference(x, params):
    """Plain-JAX f32 reference for correctness check."""
    h = jnp.maximum(x @ params["w1"] + params["b1"], 0.0)
    h = jnp.maximum(h @ params["w2"] + params["b2"], 0.0)
    h = jnp.maximum(h @ params["w3"] + params["b3"], 0.0)
    return h @ params["w4"] + params["b4"]


if __name__ == "__main__":
    # Small shapes consistent with the module: (batch, noise_dim) -> (batch, output_dim)
    batch = 8
    noise_dim = 16
    output_dim = 16
    hidden_dim = 32

    key = jax.random.PRNGKey(0)
    key, kx = jax.random.split(key)
    x = jax.random.normal(kx, (batch, noise_dim), dtype=jnp.float32)

    params = init_generator_params(key, noise_dim, output_dim, hidden_dim)

    fwd = jax.jit(functools.partial(generator_forward, batch_tile=256))
    y = fwd(x, params)
    jax.block_until_ready(y)

    y_ref = generator_reference(x, params)
    assert y.shape == (batch, output_dim)
    # bf16 matmul operands (f32 accumulation) -> looser tolerance vs f32 reference.
    max_diff = jnp.max(jnp.abs(y - y_ref))
    assert jnp.allclose(y, y_ref, atol=3e-2, rtol=3e-2), (
        f"mismatch vs reference: max abs diff {max_diff}")

    print("KERNEL_OK")
</pallas_src>

<mosaic_0001>
module attributes {stable_mosaic.version = 11 : i64} {
  func.func @_mlp_kernel(%arg0: i32, %arg1: memref<8x128xbf16, #tpu.memory_space<vmem>>, %arg2: memref<128x128xbf16, #tpu.memory_space<vmem>>, %arg3: memref<1x128xf32, #tpu.memory_space<vmem>>, %arg4: memref<128x128xbf16, #tpu.memory_space<vmem>>, %arg5: memref<1x128xf32, #tpu.memory_space<vmem>>, %arg6: memref<128x128xbf16, #tpu.memory_space<vmem>>, %arg7: memref<1x128xf32, #tpu.memory_space<vmem>>, %arg8: memref<128x128xbf16, #tpu.memory_space<vmem>>, %arg9: memref<1x128xf32, #tpu.memory_space<vmem>>, %arg10: memref<8x128xf32, #tpu.memory_space<vmem>>) attributes {dimension_semantics = [#tpu.dimension_semantics<parallel>], iteration_bounds = array<i64: 1>, scalar_prefetch = 0 : i64, scratch_operands = 0 : i64, tpu.core_type = #tpu.core_type<tc>, window_params = [{transform_indices = @transform_0, window_bounds = array<i64: 8, 128>}, {pipeline_mode = #tpu.pipeline_mode<synchronous>, transform_indices = @transform_1, window_bounds = array<i64: 128, 128>}, {pipeline_mode = #tpu.pipeline_mode<synchronous>, transform_indices = @transform_2, window_bounds = array<i64: 1, 128>}, {pipeline_mode = #tpu.pipeline_mode<synchronous>, transform_indices = @transform_3, window_bounds = array<i64: 128, 128>}, {pipeline_mode = #tpu.pipeline_mode<synchronous>, transform_indices = @transform_4, window_bounds = array<i64: 1, 128>}, {pipeline_mode = #tpu.pipeline_mode<synchronous>, transform_indices = @transform_5, window_bounds = array<i64: 128, 128>}, {pipeline_mode = #tpu.pipeline_mode<synchronous>, transform_indices = @transform_6, window_bounds = array<i64: 1, 128>}, {pipeline_mode = #tpu.pipeline_mode<synchronous>, transform_indices = @transform_7, window_bounds = array<i64: 128, 128>}, {pipeline_mode = #tpu.pipeline_mode<synchronous>, transform_indices = @transform_8, window_bounds = array<i64: 1, 128>}, {transform_indices = @transform_9, window_bounds = array<i64: 8, 128>}]} {
    %c0 = arith.constant 0 : index
    %c0_0 = arith.constant 0 : index
    %0 = vector.load %arg1[%c0, %c0_0] : memref<8x128xbf16, #tpu.memory_space<vmem>>, vector<8x128xbf16>
    %c0_1 = arith.constant 0 : index
    %c0_2 = arith.constant 0 : index
    %1 = vector.load %arg2[%c0_1, %c0_2] : memref<128x128xbf16, #tpu.memory_space<vmem>>, vector<128x128xbf16>
    %cst = arith.constant dense<0.000000e+00> : vector<8x128xf32>
    %2 = tpu.matmul %0, %1, %cst {dimension_numbers = #tpu.dot_dimension_numbers<[1], [0], [0], [1], [0, 0, 1, 1], [], []>} : vector<8x128xbf16>, vector<128x128xbf16>, vector<8x128xf32> -> vector<8x128xf32>
    %c0_3 = arith.constant 0 : index
    %c0_4 = arith.constant 0 : index
    %3 = vector.load %arg3[%c0_3, %c0_4] : memref<1x128xf32, #tpu.memory_space<vmem>>, vector<1x128xf32>
    %4 = vector.broadcast %3 : vector<1x128xf32> to vector<8x128xf32>
    %5 = arith.addf %2, %4 : vector<8x128xf32>
    %cst_5 = arith.constant 0.000000e+00 : f32
    %6 = vector.broadcast %cst_5 : f32 to vector<8x128xf32>
    %7 = arith.maximumf %5, %6 : vector<8x128xf32>
    %8 = arith.truncf %7 : vector<8x128xf32> to vector<8x128xbf16>
    %c0_6 = arith.constant 0 : index
    %c0_7 = arith.constant 0 : index
    %9 = vector.load %arg4[%c0_6, %c0_7] : memref<128x128xbf16, #tpu.memory_space<vmem>>, vector<128x128xbf16>
    %cst_8 = arith.constant dense<0.000000e+00> : vector<8x128xf32>
    %10 = tpu.matmul %8, %9, %cst_8 {dimension_numbers = #tpu.dot_dimension_numbers<[1], [0], [0], [1], [0, 0, 1, 1], [], []>} : vector<8x128xbf16>, vector<128x128xbf16>, vector<8x128xf32> -> vector<8x128xf32>
    %c0_9 = arith.constant 0 : index
    %c0_10 = arith.constant 0 : index
    %11 = vector.load %arg5[%c0_9, %c0_10] : memref<1x128xf32, #tpu.memory_space<vmem>>, vector<1x128xf32>
    %12 = vector.broadcast %11 : vector<1x128xf32> to vector<8x128xf32>
    %13 = arith.addf %10, %12 : vector<8x128xf32>
    %cst_11 = arith.constant 0.000000e+00 : f32
    %14 = vector.broadcast %cst_11 : f32 to vector<8x128xf32>
    %15 = arith.maximumf %13, %14 : vector<8x128xf32>
    %16 = arith.truncf %15 : vector<8x128xf32> to vector<8x128xbf16>
    %c0_12 = arith.constant 0 : index
    %c0_13 = arith.constant 0 : index
    %17 = vector.load %arg6[%c0_12, %c0_13] : memref<128x128xbf16, #tpu.memory_space<vmem>>, vector<128x128xbf16>
    %cst_14 = arith.constant dense<0.000000e+00> : vector<8x128xf32>
    %18 = tpu.matmul %16, %17, %cst_14 {dimension_numbers = #tpu.dot_dimension_numbers<[1], [0], [0], [1], [0, 0, 1, 1], [], []>} : vector<8x128xbf16>, vector<128x128xbf16>, vector<8x128xf32> -> vector<8x128xf32>
    %c0_15 = arith.constant 0 : index
    %c0_16 = arith.constant 0 : index
    %19 = vector.load %arg7[%c0_15, %c0_16] : memref<1x128xf32, #tpu.memory_space<vmem>>, vector<1x128xf32>
    %20 = vector.broadcast %19 : vector<1x128xf32> to vector<8x128xf32>
    %21 = arith.addf %18, %20 : vector<8x128xf32>
    %cst_17 = arith.constant 0.000000e+00 : f32
    %22 = vector.broadcast %cst_17 : f32 to vector<8x128xf32>
    %23 = arith.maximumf %21, %22 : vector<8x128xf32>
    %24 = arith.truncf %23 : vector<8x128xf32> to vector<8x128xbf16>
    %c0_18 = arith.constant 0 : index
    %c0_19 = arith.constant 0 : index
    %25 = vector.load %arg8[%c0_18, %c0_19] : memref<128x128xbf16, #tpu.memory_space<vmem>>, vector<128x128xbf16>
    %cst_20 = arith.constant dense<0.000000e+00> : vector<8x128xf32>
    %26 = tpu.matmul %24, %25, %cst_20 {dimension_numbers = #tpu.dot_dimension_numbers<[1], [0], [0], [1], [0, 0, 1, 1], [], []>} : vector<8x128xbf16>, vector<128x128xbf16>, vector<8x128xf32> -> vector<8x128xf32>
    %c0_21 = arith.constant 0 : index
    %c0_22 = arith.constant 0 : index
    %27 = vector.load %arg9[%c0_21, %c0_22] : memref<1x128xf32, #tpu.memory_space<vmem>>, vector<1x128xf32>
    %28 = vector.broadcast %27 : vector<1x128xf32> to vector<8x128xf32>
    %29 = arith.addf %26, %28 : vector<8x128xf32>
    %c0_23 = arith.constant 0 : index
    %c0_24 = arith.constant 0 : index
    %30 = vector.load %arg10[%c0_23, %c0_24] : memref<8x128xf32, #tpu.memory_space<vmem>>, vector<8x128xf32>
    tpu.vector_store %arg10[%c0_23, %c0_24], %29 {strides = array<i32>} : memref<8x128xf32, #tpu.memory_space<vmem>>, vector<8x128xf32>,
    return
  }
  func.func @transform_0(%arg0: i32) -> (i32, i32) {
    %c0_i32 = arith.constant 0 : i32
    %c0_i32_0 = arith.constant 0 : i32
    return %arg0, %c0_i32 : i32, i32
  }
  func.func @transform_1(%arg0: i32) -> (i32, i32) {
    %c0_i32 = arith.constant 0 : i32
    %c0_i32_0 = arith.constant 0 : i32
    %c0_i32_1 = arith.constant 0 : i32
    return %c0_i32, %c0_i32_0 : i32, i32
  }
  func.func @transform_2(%arg0: i32) -> (i32, i32) {
    %c0_i32 = arith.constant 0 : i32
    %c0_i32_0 = arith.constant 0 : i32
    %c0_i32_1 = arith.constant 0 : i32
    return %c0_i32, %c0_i32_0 : i32, i32
  }
  func.func @transform_3(%arg0: i32) -> (i32, i32) {
    %c0_i32 = arith.constant 0 : i32
    %c0_i32_0 = arith.constant 0 : i32
    %c0_i32_1 = arith.constant 0 : i32
    return %c0_i32, %c0_i32_0 : i32, i32
  }
  func.func @transform_4(%arg0: i32) -> (i32, i32) {
    %c0_i32 = arith.constant 0 : i32
    %c0_i32_0 = arith.constant 0 : i32
    %c0_i32_1 = arith.constant 0 : i32
    return %c0_i32, %c0_i32_0 : i32, i32
  }
  func.func @transform_5(%arg0: i32) -> (i32, i32) {
    %c0_i32 = arith.constant 0 : i32
    %c0_i32_0 = arith.constant 0 : i32
    %c0_i32_1 = arith.constant 0 : i32
    return %c0_i32, %c0_i32_0 : i32, i32
  }
  func.func @transform_6(%arg0: i32) -> (i32, i32) {
    %c0_i32 = arith.constant 0 : i32
    %c0_i32_0 = arith.constant 0 : i32
    %c0_i32_1 = arith.constant 0 : i32
    return %c0_i32, %c0_i32_0 : i32, i32
  }
  func.func @transform_7(%arg0: i32) -> (i32, i32) {
    %c0_i32 = arith.constant 0 : i32
    %c0_i32_0 = arith.constant 0 : i32
    %c0_i32_1 = arith.constant 0 : i32
    return %c0_i32, %c0_i32_0 : i32, i32
  }
  func.func @transform_8(%arg0: i32) -> (i32, i32) {
    %c0_i32 = arith.constant 0 : i32
    %c0_i32_0 = arith.constant 0 : i32
    %c0_i32_1 = arith.constant 0 : i32
    return %c0_i32, %c0_i32_0 : i32, i32
  }
  func.func @transform_9(%arg0: i32) -> (i32, i32) {
    %c0_i32 = arith.constant 0 : i32
    %c0_i32_0 = arith.constant 0 : i32
    return %arg0, %c0_i32 : i32, i32
  }
}

</mosaic_0001>

<bundles_post_ra>
// kernel: generator_forward.1
= control target key start
LH: loop header
LB: loop body
LE: loop exit
PB: predicated region body
PF: predicated region fallthrough
CT: control target
= control target key end

     0   :  { %v711_v1 = vmov 0.0   ;;  %vm712_vm0 = vmmov 0   ;;  %s927_s0 = inlined_call_operand.vmem [shape: bf16[8,128], index: 0, kind: input, shape index: {}]   ;;  %s928_s1 = inlined_call_operand.vmem [shape: bf16[128,128], index: 1, kind: input, shape index: {}]   ;;  %s929_s2 = inlined_call_operand.vmem [shape: f32[1,128], index: 2, kind: input, shape index: {}]   ;;  %s930_s3 = inlined_call_operand.vmem [shape: bf16[128,128], index: 3, kind: input, shape index: {}]   ;;  %s931_s4 = inlined_call_operand.vmem [shape: f32[1,128], index: 4, kind: input, shape index: {}]   ;;  %s932_s5 = inlined_call_operand.vmem [shape: bf16[128,128], index: 5, kind: input, shape index: {}]   ;;  %s933_s6 = inlined_call_operand.vmem [shape: f32[1,128], index: 6, kind: input, shape index: {}]   ;;  %s934_s7 = inlined_call_operand.vmem [shape: bf16[128,128], index: 7, kind: input, shape index: {}]   ;;  %s935_s8 = inlined_call_operand.vmem [shape: f32[1,128], index: 8, kind: input, shape index: {}]   ;;  %s936_s9 = inlined_call_operand.hbm [shape: f32[8,128], index: 9, kind: output, shape index: {}]  }
   0x1   :  { %v655_v0 = vld [vmem:[%s928_s1] sm:$0xff]   ;;  %572 = vmatprep.subr.bf16.mxu0 %v711_v1  ;;  %592 = vmatprep.subr.bf16.mxu1 %v711_v1  ;;  %v656_v2 = vld [vmem:[%s928_s1 + $0x8] sm:$0xff]   ;;  %v657_v3 = vld [vmem:[%s928_s1 + $0x10] sm:$0xff]  }
   0x2   :  { %573 = vmatpush3.bf16.msra.mxu0 %v655_v0  ;;  %588 = vmatprep.mubr.msk.bf16.mxu0 %vm712_vm0, %v711_v1  ;;  %v663_v4 = vld [vmem:[%s930_s3] sm:$0xff]   ;;  %v658_v5 = vld [vmem:[%s928_s1 + $0x18] sm:$0xff]   ;;  %v664_v6 = vld [vmem:[%s930_s3 + $0x8] sm:$0xff]  }
   0x3   :  { %574 = vmatprep.subr.bf16.mxu0 %v711_v1  ;;  %608 = vmatprep.mubr.msk.bf16.mxu1 %vm712_vm0, %v711_v1  ;;  %v659_v7 = vld [vmem:[%s928_s1 + $0x20] sm:$0xff]   ;;  %v665_v8 = vld [vmem:[%s930_s3 + $0x10] sm:$0xff]   ;;  %v660_v9 = vld [vmem:[%s928_s1 + $0x28] sm:$0xff]  }
   0x4   :  { %593 = vmatpush3.bf16.msra.mxu1 %v663_v4  ;;  %v666_v10 = vld [vmem:[%s930_s3 + $0x18] sm:$0xff]   ;;  %v661_v11 = vld [vmem:[%s928_s1 + $0x30] sm:$0xff]   ;;  %v667_v12 = vld [vmem:[%s930_s3 + $0x20] sm:$0xff]  }
   0x5   :  { %594 = vmatprep.subr.bf16.mxu1 %v711_v1  ;;  %v662_v13 = vld [vmem:[%s928_s1 + $0x38] sm:$0xff]  }
   0x6   :  { %575 = vmatpush3.bf16.msra.mxu0 %v656_v2 }
   0x7   :  { %576 = vmatprep.subr.bf16.mxu0 %v711_v1 }
   0x8   :  { %595 = vmatpush3.bf16.msra.mxu1 %v664_v6 }
   0x9   :  { %596 = vmatprep.subr.bf16.mxu1 %v711_v1 }
   0xa   :  { %577 = vmatpush3.bf16.msra.mxu0 %v657_v3 }
   0xb   :  { %578 = vmatprep.subr.bf16.mxu0 %v711_v1 }
   0xc   :  { %597 = vmatpush3.bf16.msra.mxu1 %v665_v8 }
   0xd   :  { %598 = vmatprep.subr.bf16.mxu1 %v711_v1 }
   0xe   :  { %579 = vmatpush3.bf16.msra.mxu0 %v658_v5 }
   0xf   :  { %580 = vmatprep.subr.bf16.mxu0 %v711_v1 }
  0x10   :  { %599 = vmatpush3.bf16.msra.mxu1 %v666_v10 }
  0x11   :  { %600 = vmatprep.subr.bf16.mxu1 %v711_v1 }
  0x12   :  { %581 = vmatpush3.bf16.msra.mxu0 %v659_v7 }
  0x13   :  { %582 = vmatprep.subr.bf16.mxu0 %v711_v1 }
  0x16   :  { %583 = vmatpush3.bf16.msra.mxu0 %v660_v9 }
  0x17   :  { %584 = vmatprep.subr.bf16.mxu0 %v711_v1 }
  0x1a   :  { %585 = vmatpush3.bf16.msra.mxu0 %v661_v11 }
  0x1b   :  { %14 = vsyncpa [#allocation3], 0  ;;  %586 = vmatprep.subr.bf16.mxu0 %v711_v1  ;;  %601 = vmatpush3.bf16.msra.mxu1 %v667_v12  ;;  %v668_v14 = vld [vmem:[%s930_s3 + $0x28] sm:$0xff]   ;;  %v34_v15 = vld [vmem:[%s927_s0] sm:$0xf]  ;;  %s713_s11 = smov [#allocation2]  }
  0x1c   :  { %602 = vmatprep.subr.bf16.mxu1 %v711_v1  ;;  %v669_v16 = vld [vmem:[%s930_s3 + $0x30] sm:$0xff]   ;;  %v670_v17 = vld [vmem:[%s930_s3 + $0x38] sm:$0xff]   ;;  %v671_v18 = vld [vmem:[%s932_s5] sm:$0xff]   ;;  %s492_s12 = sshll.u32 %s713_s11, 4  ;;  %s493_s12 = int_to_ptr.vmem [resolvable:$true] %s492_s12 }
  0x1d   :  { %v672_v19 = vld [vmem:[%s932_s5 + $0x8] sm:$0xff]   ;;  %v673_v20 = vld [vmem:[%s932_s5 + $0x10] sm:$0xff]   ;;  %v674_v21 = vld [vmem:[%s932_s5 + $0x18] sm:$0xff]   ;;  %p692_p1 = scmp.lt.s32.totalorder %s493_s12, %s493_s12 }
  0x1e   :  { %587 = vmatpush3.bf16.msra.mxu0 %v662_v13  ;;  %v675_v22 = vld [vmem:[%s932_s5 + $0x20] sm:$0xff]   ;;  %v676_v23 = vld [vmem:[%s932_s5 + $0x28] sm:$0xff]   ;;  %v677_v32 = vld [vmem:[%s932_s5 + $0x30] sm:$0xff]  }
  0x1f   :  { %603 = vmatpush3.bf16.msra.mxu1 %v668_v14  ;;  %612 = vmatprep.subr.bf16.mxu0 %v711_v1  ;;  %v500_v24 = vld [vmem:[%s929_s2] ss:$0 sm:$0xff]  ;;  %v678_v33 = vld [vmem:[%s932_s5 + $0x38] sm:$0xff]   ;;  %v680_v35 = vld [vmem:[%s934_s7 + $0x8] sm:$0xff]  }
  0x20   :  { %604 = vmatprep.subr.bf16.mxu1 %v711_v1  ;;  %v679_v34 = vld [vmem:[%s934_s7] sm:$0xff]   ;;  %v681_v36 = vld [vmem:[%s934_s7 + $0x10] sm:$0xff]   ;;  %v682_v37 = vld [vmem:[%s934_s7 + $0x18] sm:$0xff]  }
  0x21   :  { %589 = vmatmul.mubr.bf16.vlgmr.msra.gmra.mrb[0].mxu0 %v34_v15  ;;  %v683_v38 = vld [vmem:[%s934_s7 + $0x20] sm:$0xff]   ;;  %v684_v39 = vld [vmem:[%s934_s7 + $0x28] sm:$0xff]   ;;  %v685_v48 = vld [vmem:[%s934_s7 + $0x30] sm:$0xff]  }
  0x22   :  { %628 = vmatprep.mubr.msk.bf16.mxu0 %vm712_vm0, %v711_v1  ;;  %613 = vmatpush3.bf16.msra.mxu0 %v671_v18  ;;  %v509_v40 = vld [vmem:[%s931_s4] ss:$0 sm:$0xff]  ;;  %v686_v49 = vld [vmem:[%s934_s7 + $0x38] sm:$0xff]  }
  0x23   :  { %605 = vmatpush3.bf16.msra.mxu1 %v669_v16  ;;  %614 = vmatprep.subr.bf16.mxu0 %v711_v1  ;;  %v518_v50 = vld [vmem:[%s933_s6] ss:$0 sm:$0xff]  ;;  %s687_s6 = scalar_lea.vmem %s493_s12, 128 }
  0x24   :  { %606 = vmatprep.subr.bf16.mxu1 %v711_v1  ;;  %v527_v58 = vld [vmem:[%s935_s8] ss:$0 sm:$0xff]  ;;  %p688_p0 = scmp.ne.s32.totalorder %s493_s12, %s687_s6  ;;  %p693_p2 = scmp.lt.s32.totalorder %s687_s6, %s687_s6 }
  0x26   :  { %615 = vmatpush3.bf16.msra.mxu0 %v672_v19  ;;  %p694_p3 = por %p693_p2, %p692_p1 }
  0x27   :  { %607 = vmatpush3.bf16.msra.mxu1 %v670_v17  ;;  %616 = vmatprep.subr.bf16.mxu0 %v711_v1 }
  0x28   :  { %632 = vmatprep.subr.bf16.mxu1 %v711_v1  ;;  %p695_p4 = pnand %p694_p3, %p688_p0 }
  0x2a   :  { %617 = vmatpush3.bf16.msra.mxu0 %v673_v20 }
  0x2b   :  { %618 = vmatprep.subr.bf16.mxu0 %v711_v1 }
  0x2e   :  { %619 = vmatpush3.bf16.msra.mxu0 %v674_v21 }
  0x2f   :  { %620 = vmatprep.subr.bf16.mxu0 %v711_v1 }
  0x32   :  { %621 = vmatpush3.bf16.msra.mxu0 %v675_v22 }
  0x33   :  { %622 = vmatprep.subr.bf16.mxu0 %v711_v1 }
  0x36   :  { %623 = vmatpush3.bf16.msra.mxu0 %v676_v23 }
  0x37   :  { %624 = vmatprep.subr.bf16.mxu0 %v711_v1 }
  0x3a   :  { %625 = vmatpush3.bf16.msra.mxu0 %v677_v32 }
  0x3b   :  { %626 = vmatprep.subr.bf16.mxu0 %v711_v1 }
  0x3e   :  { %627 = vmatpush3.bf16.msra.mxu0 %v678_v33 }
  0xf4   :  { %v140_v25 = vpop.f32.mrb[0].mxu0 }
  0xf5   :  { %v141_v26 = vadd.f32 %v500_v24, %v140_v25  ;;  %v590_v27 = vpop.f32.mrb[1].mxu0 }
  0xf6   :  { %v143_v28 = vpop.f32.mrb[2].mxu0 }
  0xf7   :  { %v146_v29 = vmax.f32 %v141_v26, 0.0  ;;  %v591_v30 = vpop.f32.mrb[3].mxu0 }
  0xf9   :  { %v147_v31 = vpack.c.bf16 %v146_v29, %v146_v29 }
  0xfb   :  { %609 = vmatmul.mubr.bf16.vlgmr.msra.gmra.mrb[0].mxu1 %v147_v31 }
  0xfc   :  { %648 = vmatprep.mubr.msk.bf16.mxu1 %vm712_vm0, %v711_v1  ;;  %633 = vmatpush3.bf16.msra.mxu1 %v679_v34 }
  0xfd   :  { %634 = vmatprep.subr.bf16.mxu1 %v711_v1 }
 0x100   :  { %635 = vmatpush3.bf16.msra.mxu1 %v680_v35 }
 0x101   :  { %636 = vmatprep.subr.bf16.mxu1 %v711_v1 }
 0x104   :  { %637 = vmatpush3.bf16.msra.mxu1 %v681_v36 }
 0x105   :  { %638 = vmatprep.subr.bf16.mxu1 %v711_v1 }
 0x108   :  { %639 = vmatpush3.bf16.msra.mxu1 %v682_v37 }
 0x109   :  { %640 = vmatprep.subr.bf16.mxu1 %v711_v1 }
 0x10c   :  { %641 = vmatpush3.bf16.msra.mxu1 %v683_v38 }
 0x10d   :  { %642 = vmatprep.subr.bf16.mxu1 %v711_v1 }
 0x110   :  { %643 = vmatpush3.bf16.msra.mxu1 %v684_v39 }
 0x111   :  { %644 = vmatprep.subr.bf16.mxu1 %v711_v1 }
 0x114   :  { %645 = vmatpush3.bf16.msra.mxu1 %v685_v48 }
 0x115   :  { %646 = vmatprep.subr.bf16.mxu1 %v711_v1 }
 0x118   :  { %647 = vmatpush3.bf16.msra.mxu1 %v686_v49 }
 0x1ce   :  { %v253_v41 = vpop.f32.mrb[0].mxu1 }
 0x1cf   :  { %v254_v42 = vadd.f32 %v509_v40, %v253_v41  ;;  %v610_v43 = vpop.f32.mrb[1].mxu1 }
 0x1d0   :  { %v256_v44 = vpop.f32.mrb[2].mxu1 }
 0x1d1   :  { %v259_v45 = vmax.f32 %v254_v42, 0.0  ;;  %v611_v46 = vpop.f32.mrb[3].mxu1 }
 0x1d3   :  { %v260_v47 = vpack.c.bf16 %v259_v45, %v259_v45 }
 0x1d5   :  { %629 = vmatmul.mubr.bf16.vlgmr.msra.gmra.mrb[4].mxu0 %v260_v47 }
 0x2a8   :  { %v366_v51 = vpop.f32.mrb[4].mxu0 }
 0x2a9   :  { %v367_v52 = vadd.f32 %v518_v50, %v366_v51  ;;  %v630_v53 = vpop.f32.mrb[5].mxu0 }
 0x2aa   :  { %v369_v54 = vpop.f32.mrb[6].mxu0 }
 0x2ab   :  { %v372_v55 = vmax.f32 %v367_v52, 0.0  ;;  %v631_v56 = vpop.f32.mrb[7].mxu0 }
 0x2ad   :  { %v373_v57 = vpack.c.bf16 %v372_v55, %v372_v55 }
 0x2af   :  { %649 = vmatmul.mubr.bf16.vlgmr.msra.gmra.mrb[4].mxu1 %v373_v57 }
 0x382   :  { %v479_v59 = vpop.f32.mrb[4].mxu1 }
 0x383   :  { %v480_v60 = vadd.f32 %v527_v58, %v479_v59  ;;  %v650_v61 = vpop.f32.mrb[5].mxu1 }
 0x384   :  { %v482_v62 = vpop.f32.mrb[6].mxu1 }
 0x385   :  { %485 = vst [vmem:[#allocation2] sm:$0xff] %v480_v60  ;;  %v651_v63 = vpop.f32.mrb[7].mxu1 }
 0x386   :  { %698 = shalt.err (!%p695_p4)
}
 0x387   :  { %s699_s8 = scalar_lea.hbm %s936_s9, 128 }
 0x388   :  { %p700_p5 = scmp.ne.s32.totalorder %s936_s9, %s699_s8  ;;  %p703_p6 = scmp.lt.u32.totalorder %s699_s8, %s936_s9 }
 0x38a   :  { %p705_p7 = pnand %p703_p6, %p700_p5 }
 0x38c   :  { %708 = shalt.err (!%p705_p7)
}
 0x38d   :  { %495 = dma.vmem_to_hbm [thread:$0]  %s493_s12, 128, %s936_s9, [#allocation3]  }
 0x38e   :  { %709 = dma.done.wait [#allocation3], 128  }
 0x38f   :  { %710 = vsyncadd [#allocation3], 4294967168 }
 0x390   :  { %499 = vsyncpa [#allocation3], 1 }

</bundles_post_ra>
